<compile_context>
chip_gen: v5e
topology: v5e:2x2
jax: 0.10.0
libtpu: 0.0.40
codegen_flags: <defaults>
</compile_context>

<pallas_src>
import functools

import jax
import jax.numpy as jnp
from jax.experimental import pallas as pl
from jax.experimental.pallas import tpu as pltpu


def _round_up(x, m):
    return ((x + m - 1) // m) * m


def _cdiv(a, b):
    return (a + b - 1) // b


# ----------------------------------------------------------------------------- kernel
def ffn_kernel(x_ref, w1_ref, b1_ref, w2_ref, b2_ref, gamma_ref, beta_ref,
               o_ref, acc_ref):
    """Grid: (row_tiles, d_ffn_chunks). Axis 1 is a reduction over d_ffn."""
    k = pl.program_id(1)
    nk = pl.num_programs(1)

    # Single load of the input tile; derive both casts from it.
    x = x_ref[...]
    x_c = x.astype(w1_ref.dtype)          # MXU operand dtype == weight dtype

    @pl.when(k == 0)
    def _():
        acc_ref[...] = jnp.zeros_like(acc_ref)

    # linear1 chunk + bias + ReLU  (dropout1 is identity, p=0)
    h = jnp.dot(x_c, w1_ref[...], preferred_element_type=jnp.float32)
    h = jnp.maximum(h + b1_ref[...].astype(jnp.float32), 0.0)

    # linear2 chunk, accumulated in f32  (dropout2 is identity, p=0)
    acc_ref[...] += jnp.dot(h.astype(w2_ref.dtype), w2_ref[...],
                            preferred_element_type=jnp.float32)

    @pl.when(k == nk - 1)
    def _():
        y = acc_ref[...] + b2_ref[...].astype(jnp.float32)
        r = x.astype(jnp.float32) + y                       # residual
        mean = jnp.mean(r, axis=-1, keepdims=True)
        c = r - mean
        var = jnp.mean(c * c, axis=-1, keepdims=True)
        normed = c * jax.lax.rsqrt(var + 1e-5)              # nn.LayerNorm eps default
        out = (normed * gamma_ref[...].astype(jnp.float32)
               + beta_ref[...].astype(jnp.float32))
        o_ref[...] = out.astype(o_ref.dtype)


# -------------------------------------------------------------------- tile / VMEM planning
def _vmem_budget_bytes():
    cap = None
    try:
        cap = getattr(pltpu.get_tpu_info(), "vmem_capacity_bytes", None)
    except Exception:
        cap = None
    if not cap:
        cap = 64 * 1024 * 1024            # conservative default: v7x per-TC VMEM
    budget = int(cap * 0.85)              # ~15% headroom for compiler scratch
    return max(32 * 1024 * 1024, min(budget, 110 * 1024 * 1024))


def _footprint_bytes(tm, d_model, tk, w_bytes, io_bytes, tiled_ffn):
    w_buf = 2 if tiled_ffn else 1                     # single-buffered if grid-invariant
    io = 2 * 2 * tm * d_model * io_bytes              # double-buffered x + out tiles
    weights = w_buf * 2 * d_model * tk * w_bytes      # w1 chunk + w2 chunk
    vectors = 2 * tk * 4 + 3 * d_model * 4            # b1 chunk, b2/gamma/beta
    acc = tm * d_model * 4                            # f32 accumulator scratch
    work = tm * tk * 4 + 4 * tm * d_model * 4         # h + LayerNorm temporaries
    return io + weights + vectors + acc + work


def _select_tiles(n, d_model, d_ffn, w_bytes, io_bytes, budget, tile_m, tk_ffn):
    # Row tile: large (feeds the MXU, amortizes ~0.35us/step overhead), multiple
    # of 8, but guarantee >= 2 row tiles so v7x's two TensorCores both get work.
    tm = min(tile_m, _round_up(max(n, 1), 8))
    if n > 8:
        tm = min(tm, _round_up(_cdiv(n, 2), 8))
    tm = max(8, _round_up(tm, 8))

    if tk_ffn is not None:
        return tm, tk_ffn

    # d_ffn chunk candidates: whole (weights resident), then multiples of 128
    # that evenly divide d_ffn, largest first.
    tks = [d_ffn] + [t for t in range(d_ffn - 128, 0, -128)
                     if t % 128 == 0 and d_ffn % t == 0]
    while True:
        for tk in tks:
            if _footprint_bytes(tm, d_model, tk, w_bytes, io_bytes,
                                tk != d_ffn) <= budget:
                return tm, tk
        if tm <= 8:
            return tm, tks[-1]            # nothing fits cleanly; smallest chunk
        tm = max(8, _round_up(tm // 2, 8))


# ----------------------------------------------------------------------------- forward
@functools.partial(jax.jit,
                   static_argnames=("tile_m", "tk_ffn", "single_buffer_consts"))
def _ffn_forward_impl(tgt, w1, b1, w2, b2, gamma, beta, *, tile_m, tk_ffn,
                      single_buffer_consts):
    d_model = tgt.shape[-1]
    d_ffn = w1.shape[1]
    orig_shape = tgt.shape

    if tk_ffn is not None:
        if d_ffn % tk_ffn != 0 or (tk_ffn != d_ffn and tk_ffn % 128 != 0):
            raise ValueError("tk_ffn must divide d_ffn and be a multiple of 128")

    x = tgt.reshape(-1, d_model)
    n = x.shape[0]

    budget = _vmem_budget_bytes()
    if tile_m is None:
        # v5e/v6e (128 MiB VMEM) afford bigger row tiles than v7x (64 MiB).
        tile_m = 512 if budget >= 96 * 1024 * 1024 else 256

    w_bytes = jnp.dtype(w1.dtype).itemsize
    io_bytes = jnp.dtype(tgt.dtype).itemsize
    tm, tk = _select_tiles(n, d_model, d_ffn, w_bytes, io_bytes, budget,
                           tile_m, tk_ffn)

    n_pad = _round_up(max(n, 1), tm)
    if n_pad != n:
        x = jnp.pad(x, ((0, n_pad - n), (0, 0)))

    nk = d_ffn // tk
    tiled_ffn = nk > 1

    # Grid-invariant blocks -> single buffer (halves their VMEM footprint);
    # chunked weights keep the default 2 buffers so their DMA pipelines.
    const_mode = pl.Buffered(1) if single_buffer_consts else None
    w_mode = None if tiled_ffn else const_mode

    footprint = _footprint_bytes(tm, d_model, tk, w_bytes, io_bytes, tiled_ffn)
    vmem_limit = int(min(budget, max(32 * 1024 * 1024, 2 * footprint)))

    grid = (n_pad // tm, nk)

    out = pl.pallas_call(
        ffn_kernel,
        out_shape=jax.ShapeDtypeStruct((n_pad, d_model), tgt.dtype),
        grid_spec=pltpu.PrefetchScalarGridSpec(
            num_scalar_prefetch=0,
            grid=grid,
            in_specs=[
                pl.BlockSpec((tm, d_model), lambda i, k: (i, 0)),        # x rows
                pl.BlockSpec((d_model, tk), lambda i, k: (0, k),
                             pipeline_mode=w_mode),                      # w1 chunk
                pl.BlockSpec((1, tk), lambda i, k: (0, k),
                             pipeline_mode=w_mode),                      # b1 chunk
                pl.BlockSpec((tk, d_model), lambda i, k: (k, 0),
                             pipeline_mode=w_mode),                      # w2 chunk
                pl.BlockSpec((1, d_model), lambda i, k: (0, 0),
                             pipeline_mode=const_mode),                  # b2
                pl.BlockSpec((1, d_model), lambda i, k: (0, 0),
                             pipeline_mode=const_mode),                  # gamma
                pl.BlockSpec((1, d_model), lambda i, k: (0, 0),
                             pipeline_mode=const_mode),                  # beta
            ],
            out_specs=pl.BlockSpec((tm, d_model), lambda i, k: (i, 0)),
            scratch_shapes=[pltpu.VMEM((tm, d_model), jnp.float32)],
        ),
        compiler_params=pltpu.CompilerParams(
            dimension_semantics=("parallel", "arbitrary"),
            vmem_limit_bytes=vmem_limit,
        ),
    )(x, w1, b1.reshape(1, -1), w2, b2.reshape(1, -1),
      gamma.reshape(1, -1), beta.reshape(1, -1))

    if n_pad != n:
        out = out[:n]
    return out.reshape(orig_shape)


def ffn_forward(tgt, w1, b1, w2, b2, gamma, beta, *, tile_m=None, tk_ffn=None):
    """Public entry. Weights should already be in the compute dtype
    (see prepare_ffn_weights); the cast is hoisted out of the jitted forward."""
    args = (tgt, w1, b1, w2, b2, gamma, beta)
    try:
        return _ffn_forward_impl(*args, tile_m=tile_m, tk_ffn=tk_ffn,
                                 single_buffer_consts=True)
    except Exception:
        # Fallback for builds that reject pipeline_mode=pl.Buffered(1).
        return _ffn_forward_impl(*args, tile_m=tile_m, tk_ffn=tk_ffn,
                                 single_buffer_consts=False)


# ----------------------------------------------------------------------------- params
def prepare_ffn_weights(w1, b1, w2, b2, gamma, beta, compute_dtype=jnp.bfloat16):
    """One-time weight conversion (outside jit): matmul weights in compute_dtype
    (bf16 by default -> half the DMA / VMEM, MXU bf16 peak with f32 accumulate),
    biases / LayerNorm params kept in f32.  Pass compute_dtype=jnp.float32 for
    PyTorch-faithful full-precision matmuls."""
    return (w1.astype(compute_dtype), b1.astype(jnp.float32),
            w2.astype(compute_dtype), b2.astype(jnp.float32),
            gamma.astype(jnp.float32), beta.astype(jnp.float32))


def init_ffn_params(key, d_model, d_ffn, dtype=jnp.float32):
    """Deterministic init mimicking nn.Linear defaults (uniform +/- 1/sqrt(fan_in))."""
    k1, k2, k3, k4 = jax.random.split(key, 4)
    bound1 = 1.0 / jnp.sqrt(d_model)
    bound2 = 1.0 / jnp.sqrt(d_ffn)
    # Weights stored as (in, out) so the kernel does x @ W (PyTorch stores (out, in)).
    w1 = jax.random.uniform(k1, (d_model, d_ffn), dtype, -bound1, bound1)
    b1 = jax.random.uniform(k2, (d_ffn,), dtype, -bound1, bound1)
    w2 = jax.random.uniform(k3, (d_ffn, d_model), dtype, -bound2, bound2)
    b2 = jax.random.uniform(k4, (d_model,), dtype, -bound2, bound2)
    gamma = jnp.ones((d_model,), dtype)
    beta = jnp.zeros((d_model,), dtype)
    return w1, b1, w2, b2, gamma, beta


def ffn_reference(tgt, w1, b1, w2, b2, gamma, beta):
    """Pure-f32 reference matching the PyTorch module semantics (dropout p=0)."""
    x = tgt.astype(jnp.float32)
    h = jnp.dot(x, w1.astype(jnp.float32),
                precision=jax.lax.Precision.HIGHEST) + b1.astype(jnp.float32)
    h = jnp.maximum(h, 0.0)
    y = jnp.dot(h, w2.astype(jnp.float32),
                precision=jax.lax.Precision.HIGHEST) + b2.astype(jnp.float32)
    r = x + y
    mean = jnp.mean(r, axis=-1, keepdims=True)
    var = jnp.mean((r - mean) ** 2, axis=-1, keepdims=True)
    out = (r - mean) * jax.lax.rsqrt(var + 1e-5)
    return (out * gamma.astype(jnp.float32)
            + beta.astype(jnp.float32)).astype(tgt.dtype)


# ------------------------------------------------------------------------------- main
if __name__ == "__main__":
    # Small but lane-dense shapes: d_model / d_ffn multiples of 128.
    d_model, d_ffn = 128, 256
    seq, batch = 8, 2

    key = jax.random.PRNGKey(0)
    k_x, k_p, k_x2 = jax.random.split(key, 3)
    tgt = jax.random.normal(k_x, (seq, batch, d_model), jnp.float32)

    raw = init_ffn_params(k_p, d_model, d_ffn)          # f32 (PyTorch-style) params
    params = prepare_ffn_weights(*raw)                  # one-time bf16 weight cast

    ref = ffn_reference(tgt, *raw)

    # 1) default path: weights fully resident (single d_ffn chunk), >=2 row tiles
    out = jax.block_until_ready(ffn_forward(tgt, *params))
    assert out.shape == tgt.shape and out.dtype == tgt.dtype
    assert jnp.allclose(out, ref, atol=3e-2, rtol=3e-2), "mismatch vs f32 reference"

    # 2) force the d_ffn-tiled accumulator path (2 reduction steps over d_ffn)
    out_k = jax.block_until_ready(ffn_forward(tgt, *params, tk_ffn=128))
    assert jnp.allclose(out_k, ref, atol=3e-2, rtol=3e-2), "tiled-ffn mismatch"
    assert jnp.allclose(out_k, out, atol=1e-3, rtol=1e-3), "tiled vs resident mismatch"

    # 3) f32-weight path (PyTorch-faithful dtype), second dtype specialization
    params_f32 = prepare_ffn_weights(*raw, compute_dtype=jnp.float32)
    out_f32 = jax.block_until_ready(ffn_forward(tgt, *params_f32))
    assert jnp.allclose(out_f32, ref, atol=3e-2, rtol=3e-2), "f32-weight mismatch"

    # 4) ragged row count (19*2 = 38 rows) exercises the pad/slice path
    tgt2 = jax.random.normal(k_x2, (19, 2, d_model), jnp.float32)
    out2 = jax.block_until_ready(ffn_forward(tgt2, *params))
    ref2 = ffn_reference(tgt2, *raw)
    assert out2.shape == tgt2.shape
    assert jnp.allclose(out2, ref2, atol=3e-2, rtol=3e-2), "ragged mismatch"

    print("KERNEL_OK")
</pallas_src>

<mosaic_0001>
module attributes {stable_mosaic.version = 11 : i64} {
  func.func @ffn_kernel(%arg0: i32, %arg1: i32, %arg2: memref<8x128xf32, #tpu.memory_space<vmem>>, %arg3: memref<128x256xbf16, #tpu.memory_space<vmem>>, %arg4: memref<1x256xf32, #tpu.memory_space<vmem>>, %arg5: memref<256x128xbf16, #tpu.memory_space<vmem>>, %arg6: memref<1x128xf32, #tpu.memory_space<vmem>>, %arg7: memref<1x128xf32, #tpu.memory_space<vmem>>, %arg8: memref<1x128xf32, #tpu.memory_space<vmem>>, %arg9: memref<8x128xf32, #tpu.memory_space<vmem>>, %arg10: memref<8x128xf32, #tpu.memory_space<vmem>>) attributes {dimension_semantics = [#tpu.dimension_semantics<parallel>, #tpu.dimension_semantics<arbitrary>], iteration_bounds = array<i64: 2, 1>, scalar_prefetch = 0 : i64, scratch_operands = 1 : i64, tpu.core_type = #tpu.core_type<tc>, window_params = [{transform_indices = @transform_0, window_bounds = array<i64: 8, 128>}, {pipeline_mode = #tpu.pipeline_mode<synchronous>, transform_indices = @transform_1, window_bounds = array<i64: 128, 256>}, {pipeline_mode = #tpu.pipeline_mode<synchronous>, transform_indices = @transform_2, window_bounds = array<i64: 1, 256>}, {pipeline_mode = #tpu.pipeline_mode<synchronous>, transform_indices = @transform_3, window_bounds = array<i64: 256, 128>}, {pipeline_mode = #tpu.pipeline_mode<synchronous>, transform_indices = @transform_4, window_bounds = array<i64: 1, 128>}, {pipeline_mode = #tpu.pipeline_mode<synchronous>, transform_indices = @transform_5, window_bounds = array<i64: 1, 128>}, {pipeline_mode = #tpu.pipeline_mode<synchronous>, transform_indices = @transform_6, window_bounds = array<i64: 1, 128>}, {transform_indices = @transform_7, window_bounds = array<i64: 8, 128>}]} {
    %c0 = arith.constant 0 : index
    %c0_0 = arith.constant 0 : index
    %0 = vector.load %arg2[%c0, %c0_0] : memref<8x128xf32, #tpu.memory_space<vmem>>, vector<8x128xf32>
    %1 = arith.truncf %0 : vector<8x128xf32> to vector<8x128xbf16>
    %c0_i32 = arith.constant 0 : i32
    %2 = arith.cmpi eq, %arg1, %c0_i32 : i32
    %3 = arith.extui %2 : i1 to i32
    %c0_i32_1 = arith.constant 0 : i32
    %4 = arith.cmpi ne, %3, %c0_i32_1 : i32
    scf.if %4 {
      %cst_16 = arith.constant 0.000000e+00 : f32
      %21 = vector.broadcast %cst_16 : f32 to vector<8x128xf32>
      %c0_17 = arith.constant 0 : index
      %c0_18 = arith.constant 0 : index
      %22 = vector.load %arg10[%c0_17, %c0_18] : memref<8x128xf32, #tpu.memory_space<vmem>>, vector<8x128xf32>
      tpu.vector_store %arg10[%c0_17, %c0_18], %21 {strides = array<i32>} : memref<8x128xf32, #tpu.memory_space<vmem>>, vector<8x128xf32>,
    } else {
    }
    %c0_2 = arith.constant 0 : index
    %c0_3 = arith.constant 0 : index
    %5 = vector.load %arg3[%c0_2, %c0_3] : memref<128x256xbf16, #tpu.memory_space<vmem>>, vector<128x256xbf16>
    %cst = arith.constant dense<0.000000e+00> : vector<8x256xf32>
    %6 = tpu.matmul %1, %5, %cst {dimension_numbers = #tpu.dot_dimension_numbers<[1], [0], [0], [1], [0, 0, 1, 1], [], []>} : vector<8x128xbf16>, vector<128x256xbf16>, vector<8x256xf32> -> vector<8x256xf32>
    %c0_4 = arith.constant 0 : index
    %c0_5 = arith.constant 0 : index
    %7 = vector.load %arg4[%c0_4, %c0_5] : memref<1x256xf32, #tpu.memory_space<vmem>>, vector<1x256xf32>
    %8 = vector.broadcast %7 : vector<1x256xf32> to vector<8x256xf32>
    %9 = arith.addf %6, %8 : vector<8x256xf32>
    %cst_6 = arith.constant 0.000000e+00 : f32
    %10 = vector.broadcast %cst_6 : f32 to vector<8x256xf32>
    %11 = arith.maximumf %9, %10 : vector<8x256xf32>
    %c0_7 = arith.constant 0 : index
    %c0_8 = arith.constant 0 : index
    %12 = vector.load %arg10[%c0_7, %c0_8] : memref<8x128xf32, #tpu.memory_space<vmem>>, vector<8x128xf32>
    %13 = arith.truncf %11 : vector<8x256xf32> to vector<8x256xbf16>
    %c0_9 = arith.constant 0 : index
    %c0_10 = arith.constant 0 : index
    %14 = vector.load %arg5[%c0_9, %c0_10] : memref<256x128xbf16, #tpu.memory_space<vmem>>, vector<256x128xbf16>
    %cst_11 = arith.constant dense<0.000000e+00> : vector<8x128xf32>
    %15 = tpu.matmul %13, %14, %cst_11 {dimension_numbers = #tpu.dot_dimension_numbers<[1], [0], [0], [1], [0, 0, 1, 1], [], []>} : vector<8x256xbf16>, vector<256x128xbf16>, vector<8x128xf32> -> vector<8x128xf32>
    %16 = arith.addf %12, %15 : vector<8x128xf32>
    %c0_12 = arith.constant 0 : index
    %c0_13 = arith.constant 0 : index
    %17 = vector.load %arg10[%c0_12, %c0_13] : memref<8x128xf32, #tpu.memory_space<vmem>>, vector<8x128xf32>
    tpu.vector_store %arg10[%c0_12, %c0_13], %16 {strides = array<i32>} : memref<8x128xf32, #tpu.memory_space<vmem>>, vector<8x128xf32>,
    %c0_i32_14 = arith.constant 0 : i32
    %18 = arith.cmpi eq, %arg1, %c0_i32_14 : i32
    %19 = arith.extui %18 : i1 to i32
    %c0_i32_15 = arith.constant 0 : i32
    %20 = arith.cmpi ne, %19, %c0_i32_15 : i32
    scf.if %20 {
      %c0_16 = arith.constant 0 : index
      %c0_17 = arith.constant 0 : index
      %21 = vector.load %arg10[%c0_16, %c0_17] : memref<8x128xf32, #tpu.memory_space<vmem>>, vector<8x128xf32>
      %c0_18 = arith.constant 0 : index
      %c0_19 = arith.constant 0 : index
      %22 = vector.load %arg6[%c0_18, %c0_19] : memref<1x128xf32, #tpu.memory_space<vmem>>, vector<1x128xf32>
      %23 = vector.broadcast %22 : vector<1x128xf32> to vector<8x128xf32>
      %24 = arith.addf %21, %23 : vector<8x128xf32>
      %25 = arith.addf %0, %24 : vector<8x128xf32>
      %cst_20 = arith.constant dense<0.000000e+00> : vector<8xf32>
      %26 = vector.multi_reduction <add>, %25, %cst_20 [1] : vector<8x128xf32> to vector<8xf32>
      %27 = vector.shape_cast %26 : vector<8xf32> to vector<8x1xf32>
      %cst_21 = arith.constant 1.280000e+02 : f32
      %28 = vector.broadcast %cst_21 : f32 to vector<8x1xf32>
      %29 = arith.divf %27, %28 : vector<8x1xf32>
      %30 = vector.broadcast %29 : vector<8x1xf32> to vector<8x128xf32>
      %31 = arith.subf %25, %30 : vector<8x128xf32>
      %32 = arith.mulf %31, %31 : vector<8x128xf32>
      %cst_22 = arith.constant dense<0.000000e+00> : vector<8xf32>
      %33 = vector.multi_reduction <add>, %32, %cst_22 [1] : vector<8x128xf32> to vector<8xf32>
      %34 = vector.shape_cast %33 : vector<8xf32> to vector<8x1xf32>
      %cst_23 = arith.constant 1.280000e+02 : f32
      %35 = vector.broadcast %cst_23 : f32 to vector<8x1xf32>
      %36 = arith.divf %34, %35 : vector<8x1xf32>
      %cst_24 = arith.constant 9.99999974E-6 : f32
      %37 = vector.broadcast %cst_24 : f32 to vector<8x1xf32>
      %38 = arith.addf %36, %37 : vector<8x1xf32>
      %39 = math.rsqrt %38 : vector<8x1xf32>
      %40 = vector.broadcast %39 : vector<8x1xf32> to vector<8x128xf32>
      %41 = arith.mulf %31, %40 : vector<8x128xf32>
      %c0_25 = arith.constant 0 : index
      %c0_26 = arith.constant 0 : index
      %42 = vector.load %arg7[%c0_25, %c0_26] : memref<1x128xf32, #tpu.memory_space<vmem>>, vector<1x128xf32>
      %43 = vector.broadcast %42 : vector<1x128xf32> to vector<8x128xf32>
      %44 = arith.mulf %41, %43 : vector<8x128xf32>
      %c0_27 = arith.constant 0 : index
      %c0_28 = arith.constant 0 : index
      %45 = vector.load %arg8[%c0_27, %c0_28] : memref<1x128xf32, #tpu.memory_space<vmem>>, vector<1x128xf32>
      %46 = vector.broadcast %45 : vector<1x128xf32> to vector<8x128xf32>
      %47 = arith.addf %44, %46 : vector<8x128xf32>
      %c0_29 = arith.constant 0 : index
      %c0_30 = arith.constant 0 : index
      %48 = vector.load %arg9[%c0_29, %c0_30] : memref<8x128xf32, #tpu.memory_space<vmem>>, vector<8x128xf32>
      tpu.vector_store %arg9[%c0_29, %c0_30], %47 {strides = array<i32>} : memref<8x128xf32, #tpu.memory_space<vmem>>, vector<8x128xf32>,
    } else {
    }
    return
  }
  func.func @transform_0(%arg0: i32, %arg1: i32) -> (i32, i32) {
    %c0_i32 = arith.constant 0 : i32
    %c0_i32_0 = arith.constant 0 : i32
    return %arg0, %c0_i32 : i32, i32
  }
  func.func @transform_1(%arg0: i32, %arg1: i32) -> (i32, i32) {
    %c0_i32 = arith.constant 0 : i32
    %c0_i32_0 = arith.constant 0 : i32
    return %c0_i32, %arg1 : i32, i32
  }
  func.func @transform_2(%arg0: i32, %arg1: i32) -> (i32, i32) {
    %c0_i32 = arith.constant 0 : i32
    %c0_i32_0 = arith.constant 0 : i32
    return %c0_i32, %arg1 : i32, i32
  }
  func.func @transform_3(%arg0: i32, %arg1: i32) -> (i32, i32) {
    %c0_i32 = arith.constant 0 : i32
    %c0_i32_0 = arith.constant 0 : i32
    return %arg1, %c0_i32 : i32, i32
  }
  func.func @transform_4(%arg0: i32, %arg1: i32) -> (i32, i32) {
    %c0_i32 = arith.constant 0 : i32
    %c0_i32_0 = arith.constant 0 : i32
    %c0_i32_1 = arith.constant 0 : i32
    return %c0_i32, %c0_i32_0 : i32, i32
  }
  func.func @transform_5(%arg0: i32, %arg1: i32) -> (i32, i32) {
    %c0_i32 = arith.constant 0 : i32
    %c0_i32_0 = arith.constant 0 : i32
    %c0_i32_1 = arith.constant 0 : i32
    return %c0_i32, %c0_i32_0 : i32, i32
  }
  func.func @transform_6(%arg0: i32, %arg1: i32) -> (i32, i32) {
    %c0_i32 = arith.constant 0 : i32
    %c0_i32_0 = arith.constant 0 : i32
    %c0_i32_1 = arith.constant 0 : i32
    return %c0_i32, %c0_i32_0 : i32, i32
  }
  func.func @transform_7(%arg0: i32, %arg1: i32) -> (i32, i32) {
    %c0_i32 = arith.constant 0 : i32
    %c0_i32_0 = arith.constant 0 : i32
    return %arg0, %c0_i32 : i32, i32
  }
}

module attributes {stable_mosaic.version = 11 : i64} {
  func.func @ffn_kernel(%arg0: i32, %arg1: i32, %arg2: memref<8x128xf32, #tpu.memory_space<vmem>>, %arg3: memref<128x256xbf16, #tpu.memory_space<vmem>>, %arg4: memref<1x256xf32, #tpu.memory_space<vmem>>, %arg5: memref<256x128xbf16, #tpu.memory_space<vmem>>, %arg6: memref<1x128xf32, #tpu.memory_space<vmem>>, %arg7: memref<1x128xf32, #tpu.memory_space<vmem>>, %arg8: memref<1x128xf32, #tpu.memory_space<vmem>>, %arg9: memref<8x128xf32, #tpu.memory_space<vmem>>, %arg10: memref<8x128xf32, #tpu.memory_space<vmem>>) attributes {dimension_semantics = [#tpu.dimension_semantics<parallel>, #tpu.dimension_semantics<arbitrary>], iteration_bounds = array<i64: 2, 1>, scalar_prefetch = 0 : i64, scratch_operands = 1 : i64, tpu.core_type = #tpu.core_type<tc>, window_params = [{transform_indices = @transform_0, window_bounds = array<i64: 8, 128>}, {transform_indices = @transform_1, window_bounds = array<i64: 128, 256>}, {transform_indices = @transform_2, window_bounds = array<i64: 1, 256>}, {transform_indices = @transform_3, window_bounds = array<i64: 256, 128>}, {pipeline_mode = #tpu.pipeline_mode<synchronous>, transform_indices = @transform_4, window_bounds = array<i64: 1, 128>}, {pipeline_mode = #tpu.pipeline_mode<synchronous>, transform_indices = @transform_5, window_bounds = array<i64: 1, 128>}, {pipeline_mode = #tpu.pipeline_mode<synchronous>, transform_indices = @transform_6, window_bounds = array<i64: 1, 128>}, {transform_indices = @transform_7, window_bounds = array<i64: 8, 128>}]} {
    %c0 = arith.constant 0 : index
    %c0_0 = arith.constant 0 : index
    %0 = vector.load %arg2[%c0, %c0_0] : memref<8x128xf32, #tpu.memory_space<vmem>>, vector<8x128xf32>
    %1 = arith.truncf %0 : vector<8x128xf32> to vector<8x128xbf16>
    %c0_i32 = arith.constant 0 : i32
    %2 = arith.cmpi eq, %arg1, %c0_i32 : i32
    %3 = arith.extui %2 : i1 to i32
    %c0_i32_1 = arith.constant 0 : i32
    %4 = arith.cmpi ne, %3, %c0_i32_1 : i32
    scf.if %4 {
      %cst_16 = arith.constant 0.000000e+00 : f32
      %21 = vector.broadcast %cst_16 : f32 to vector<8x128xf32>
      %c0_17 = arith.constant 0 : index
      %c0_18 = arith.constant 0 : index
      %22 = vector.load %arg10[%c0_17, %c0_18] : memref<8x128xf32, #tpu.memory_space<vmem>>, vector<8x128xf32>
      tpu.vector_store %arg10[%c0_17, %c0_18], %21 {strides = array<i32>} : memref<8x128xf32, #tpu.memory_space<vmem>>, vector<8x128xf32>,
    } else {
    }
    %c0_2 = arith.constant 0 : index
    %c0_3 = arith.constant 0 : index
    %5 = vector.load %arg3[%c0_2, %c0_3] : memref<128x256xbf16, #tpu.memory_space<vmem>>, vector<128x256xbf16>
    %cst = arith.constant dense<0.000000e+00> : vector<8x256xf32>
    %6 = tpu.matmul %1, %5, %cst {dimension_numbers = #tpu.dot_dimension_numbers<[1], [0], [0], [1], [0, 0, 1, 1], [], []>} : vector<8x128xbf16>, vector<128x256xbf16>, vector<8x256xf32> -> vector<8x256xf32>
    %c0_4 = arith.constant 0 : index
    %c0_5 = arith.constant 0 : index
    %7 = vector.load %arg4[%c0_4, %c0_5] : memref<1x256xf32, #tpu.memory_space<vmem>>, vector<1x256xf32>
    %8 = vector.broadcast %7 : vector<1x256xf32> to vector<8x256xf32>
    %9 = arith.addf %6, %8 : vector<8x256xf32>
    %cst_6 = arith.constant 0.000000e+00 : f32
    %10 = vector.broadcast %cst_6 : f32 to vector<8x256xf32>
    %11 = arith.maximumf %9, %10 : vector<8x256xf32>
    %c0_7 = arith.constant 0 : index
    %c0_8 = arith.constant 0 : index
    %12 = vector.load %arg10[%c0_7, %c0_8] : memref<8x128xf32, #tpu.memory_space<vmem>>, vector<8x128xf32>
    %13 = arith.truncf %11 : vector<8x256xf32> to vector<8x256xbf16>
    %c0_9 = arith.constant 0 : index
    %c0_10 = arith.constant 0 : index
    %14 = vector.load %arg5[%c0_9, %c0_10] : memref<256x128xbf16, #tpu.memory_space<vmem>>, vector<256x128xbf16>
    %cst_11 = arith.constant dense<0.000000e+00> : vector<8x128xf32>
    %15 = tpu.matmul %13, %14, %cst_11 {dimension_numbers = #tpu.dot_dimension_numbers<[1], [0], [0], [1], [0, 0, 1, 1], [], []>} : vector<8x256xbf16>, vector<256x128xbf16>, vector<8x128xf32> -> vector<8x128xf32>
    %16 = arith.addf %12, %15 : vector<8x128xf32>
    %c0_12 = arith.constant 0 : index
    %c0_13 = arith.constant 0 : index
    %17 = vector.load %arg10[%c0_12, %c0_13] : memref<8x128xf32, #tpu.memory_space<vmem>>, vector<8x128xf32>
    tpu.vector_store %arg10[%c0_12, %c0_13], %16 {strides = array<i32>} : memref<8x128xf32, #tpu.memory_space<vmem>>, vector<8x128xf32>,
    %c0_i32_14 = arith.constant 0 : i32
    %18 = arith.cmpi eq, %arg1, %c0_i32_14 : i32
    %19 = arith.extui %18 : i1 to i32
    %c0_i32_15 = arith.constant 0 : i32
    %20 = arith.cmpi ne, %19, %c0_i32_15 : i32
    scf.if %20 {
      %c0_16 = arith.constant 0 : index
      %c0_17 = arith.constant 0 : index
      %21 = vector.load %arg10[%c0_16, %c0_17] : memref<8x128xf32, #tpu.memory_space<vmem>>, vector<8x128xf32>
      %c0_18 = arith.constant 0 : index
      %c0_19 = arith.constant 0 : index
      %22 = vector.load %arg6[%c0_18, %c0_19] : memref<1x128xf32, #tpu.memory_space<vmem>>, vector<1x128xf32>
      %23 = vector.broadcast %22 : vector<1x128xf32> to vector<8x128xf32>
      %24 = arith.addf %21, %23 : vector<8x128xf32>
      %25 = arith.addf %0, %24 : vector<8x128xf32>
      %cst_20 = arith.constant dense<0.000000e+00> : vector<8xf32>
      %26 = vector.multi_reduction <add>, %25, %cst_20 [1] : vector<8x128xf32> to vector<8xf32>
      %27 = vector.shape_cast %26 : vector<8xf32> to vector<8x1xf32>
      %cst_21 = arith.constant 1.280000e+02 : f32
      %28 = vector.broadcast %cst_21 : f32 to vector<8x1xf32>
      %29 = arith.divf %27, %28 : vector<8x1xf32>
      %30 = vector.broadcast %29 : vector<8x1xf32> to vector<8x128xf32>
      %31 = arith.subf %25, %30 : vector<8x128xf32>
      %32 = arith.mulf %31, %31 : vector<8x128xf32>
      %cst_22 = arith.constant dense<0.000000e+00> : vector<8xf32>
      %33 = vector.multi_reduction <add>, %32, %cst_22 [1] : vector<8x128xf32> to vector<8xf32>
      %34 = vector.shape_cast %33 : vector<8xf32> to vector<8x1xf32>
      %cst_23 = arith.constant 1.280000e+02 : f32
      %35 = vector.broadcast %cst_23 : f32 to vector<8x1xf32>
      %36 = arith.divf %34, %35 : vector<8x1xf32>
      %cst_24 = arith.constant 9.99999974E-6 : f32
      %37 = vector.broadcast %cst_24 : f32 to vector<8x1xf32>
      %38 = arith.addf %36, %37 : vector<8x1xf32>
      %39 = math.rsqrt %38 : vector<8x1xf32>
      %40 = vector.broadcast %39 : vector<8x1xf32> to vector<8x128xf32>
      %41 = arith.mulf %31, %40 : vector<8x128xf32>
      %c0_25 = arith.constant 0 : index
      %c0_26 = arith.constant 0 : index
      %42 = vector.load %arg7[%c0_25, %c0_26] : memref<1x128xf32, #tpu.memory_space<vmem>>, vector<1x128xf32>
      %43 = vector.broadcast %42 : vector<1x128xf32> to vector<8x128xf32>
      %44 = arith.mulf %41, %43 : vector<8x128xf32>
      %c0_27 = arith.constant 0 : index
      %c0_28 = arith.constant 0 : index
      %45 = vector.load %arg8[%c0_27, %c0_28] : memref<1x128xf32, #tpu.memory_space<vmem>>, vector<1x128xf32>
      %46 = vector.broadcast %45 : vector<1x128xf32> to vector<8x128xf32>
      %47 = arith.addf %44, %46 : vector<8x128xf32>
      %c0_29 = arith.constant 0 : index
      %c0_30 = arith.constant 0 : index
      %48 = vector.load %arg9[%c0_29, %c0_30] : memref<8x128xf32, #tpu.memory_space<vmem>>, vector<8x128xf32>
      tpu.vector_store %arg9[%c0_29, %c0_30], %47 {strides = array<i32>} : memref<8x128xf32, #tpu.memory_space<vmem>>, vector<8x128xf32>,
    } else {
    }
    return
  }
  func.func @transform_0(%arg0: i32, %arg1: i32) -> (i32, i32) {
    %c0_i32 = arith.constant 0 : i32
    %c0_i32_0 = arith.constant 0 : i32
    return %arg0, %c0_i32 : i32, i32
  }
  func.func @transform_1(%arg0: i32, %arg1: i32) -> (i32, i32) {
    %c0_i32 = arith.constant 0 : i32
    %c0_i32_0 = arith.constant 0 : i32
    return %c0_i32, %arg1 : i32, i32
  }
  func.func @transform_2(%arg0: i32, %arg1: i32) -> (i32, i32) {
    %c0_i32 = arith.constant 0 : i32
    %c0_i32_0 = arith.constant 0 : i32
    return %c0_i32, %arg1 : i32, i32
  }
  func.func @transform_3(%arg0: i32, %arg1: i32) -> (i32, i32) {
    %c0_i32 = arith.constant 0 : i32
    %c0_i32_0 = arith.constant 0 : i32
    return %arg1, %c0_i32 : i32, i32
  }
  func.func @transform_4(%arg0: i32, %arg1: i32) -> (i32, i32) {
    %c0_i32 = arith.constant 0 : i32
    %c0_i32_0 = arith.constant 0 : i32
    %c0_i32_1 = arith.constant 0 : i32
    return %c0_i32, %c0_i32_0 : i32, i32
  }
  func.func @transform_5(%arg0: i32, %arg1: i32) -> (i32, i32) {
    %c0_i32 = arith.constant 0 : i32
    %c0_i32_0 = arith.constant 0 : i32
    %c0_i32_1 = arith.constant 0 : i32
    return %c0_i32, %c0_i32_0 : i32, i32
  }
  func.func @transform_6(%arg0: i32, %arg1: i32) -> (i32, i32) {
    %c0_i32 = arith.constant 0 : i32
    %c0_i32_0 = arith.constant 0 : i32
    %c0_i32_1 = arith.constant 0 : i32
    return %c0_i32, %c0_i32_0 : i32, i32
  }
  func.func @transform_7(%arg0: i32, %arg1: i32) -> (i32, i32) {
    %c0_i32 = arith.constant 0 : i32
    %c0_i32_0 = arith.constant 0 : i32
    return %arg0, %c0_i32 : i32, i32
  }
}

</mosaic_0001>

<bundles_post_ra>
// kernel: _ffn_forward_impl.1
= control target key start
LH: loop header
LB: loop body
LE: loop exit
PB: predicated region body
PF: predicated region fallthrough
CT: control target
= control target key end

     0   :  { %s1512_s0 = inlined_call_operand.hbm [shape: f32[16,128], index: 0, kind: input, shape index: {}]   ;;  %s1513_s1 = inlined_call_operand.hbm [shape: bf16[128,256], index: 1, kind: input, shape index: {}]   ;;  %s1514_s2 = inlined_call_operand.vmem [shape: f32[1,256], index: 2, kind: input, shape index: {}]   ;;  %s1515_s3 = inlined_call_operand.hbm [shape: bf16[256,128], index: 3, kind: input, shape index: {}]   ;;  %s1516_s4 = inlined_call_operand.vmem [shape: f32[1,128], index: 4, kind: input, shape index: {}]   ;;  %s1517_s5 = inlined_call_operand.vmem [shape: f32[1,128], index: 5, kind: input, shape index: {}]   ;;  %s1518_s6 = inlined_call_operand.vmem [shape: f32[1,128], index: 6, kind: input, shape index: {}]   ;;  %s1519_s7 = inlined_call_operand.hbm [shape: f32[16,128], index: 7, kind: output, shape index: {}]  }
   0x1   :  { %1520 = sst [smem:[#allocation13_spill]] %s1513_s1 }
   0x2   :  { %12 = vsyncpa [#allocation4], 0 }
   0x3   :  { %14 = vsyncpa [#allocation4 + $0x1], 0 }
   0x4   :  { %15 = vsyncpa [#allocation7], 0 }
   0x5   :  { %16 = vsyncpa [#allocation5], 0 }
   0x6   :  { %18 = vsyncpa [#allocation5 + $0x1], 0  ;;  %s1349_s24 = smov 0   ;;  %s1351_s25 = smov 0  }
   0x7   :  { %s1353_s26 = smov 0   ;;  %s1355_s27 = smov 0  }
   0x8   :  { %s1357_s28 = smov 0   ;;  %s1359_s29 = smov 0  }
   0x9 LB: > { %s851_s30 = sadd.s32 4294967295, %s1300_s29   ;;  %p853_p0 = scmp.ge.s32.totalorder %s1300_s29, 1  ;;  %s1300_s29 = sphi %s1359_s29, %s24_s29   ;;  %s1296_s28 = sphi %s1357_s28, %s1531_s28   ;;  %s1292_s27 = sphi %s1355_s27, %s1530_s27   ;;  %s1288_s26 = sphi %s1353_s26, %s1529_s26   ;;  %s1284_s25 = sphi %s1351_s25, %s1528_s25   ;;  %s1280_s24 = sphi %s1349_s24, %s1527_s24  }
   0xa   : > { %p1383_p1 = scmp.eq.s32.totalorder %s851_s30, 0  ;;  %p234_p2 = scmp.lt.s32.totalorder %s1300_s29, 3 }
   0xb   : > { %s1522_s1 = sld [smem:[#allocation13_spill]]  ;;  %s1302_s13 = smov [#allocation6]  }
   0xc   : > { %p1391_p3 = pnand %p853_p0, %p234_p2  ;;  %s250_s14 = sshll.u32 %s1302_s13, 4  ;;  %s251_s14 = int_to_ptr.vmem [resolvable:$true] %s250_s14 }
   0xd   : > { %p857_p6 = scmp.ge.s32.totalorder %s1300_s29, 2  ;;  %s273_s17 = sshll.u32 %s1515_s3, 4  ;;  %s274_s17 = int_to_ptr.hbm [resolvable:$true] %s273_s17 }
   0xe   : > { %p1041_p4 = pneg %p1391_p3  ;;  %s1303_s18 = smov 128  }
   0xf   : > { %s1304_s19 = smov 8   ;;  %s1305_s20 = smov [#allocation8]  }
  0x10   : > { %p1042_p5 = pnand %p1041_p4, %p1383_p1  ;;  %s275_s21 = sshll.u32 %s1305_s20, 4  ;;  %s276_s21 = int_to_ptr.vmem [resolvable:$true] %s275_s21 }
  0x11   : > { %s248_s11 = sshll.u32 %s1522_s1, 4  ;;  %s1306_s22 = smov 64   ;;  %s249_s11 = int_to_ptr.hbm [resolvable:$true] %s248_s11 }
  0x12   : > { %1044 = dma.hbm_to_vmem [thread:$0]  (!%p1042_p5), %s249_s11, 2048, %s251_s14, [#allocation7], %s1303_s18, %s1303_s18, %s1304_s19  }
  0x13   : > { %s1307_s23 = smov 4   ;;  %s36_s9 = sadd.s32 1, %s1296_s28 }
  0x14   : > { %1047 = dma.hbm_to_vmem [thread:$0]  (!%p1042_p5), %s274_s17, 2048, %s276_s21, [#allocation7], %s1306_s22, %s1306_s22, %s1307_s23  }
  0x15   : > { %s852_s10 = sadd.s32 4294967294, %s1300_s29   ;;  %p38_p7 = scmp.ge.s32.totalorder %s36_s9, 2 }
  0x16   : > { %s43_s13 = sadd.s32 1, %s1288_s26  ;;  %p50_p8 = scmp.ne.s32.totalorder %s1288_s26, %s1284_s25 }
  0x17   : > { %s1533_s9 = smov (%p38_p7, %s36_s9), 0  ;;  %p51_p9 = scmp.eq.s32.totalorder %s1300_s29, 0 }
  0x18   : > { %p56_p10 = scmp.ne.s32.totalorder %s1284_s25, %s1280_s24  ;;  %s40_s11 = ssub.s32 %s1296_s28, %s1533_s9 }
  0x19   : > { %p221_p11 = scmp.eq.s32.totalorder %s851_s30, 1  ;;  %p41_p12 = scmp.eq.s32.totalorder %s40_s11, 0 }
  0x1a   : > { %p1419_p13 = por %p1383_p1, %p56_p10  ;;  %p227_p2 = scmp.eq.s32.totalorder %s852_s10, 1 }
  0x1b   : > { %p1423_p0 = por %p221_p11, %p50_p8  ;;  %p52_p4 = por %p51_p9, %p50_p8 }
  0x1c   : > { %s1428_s16 = scalar_select %p41_p12, %s1288_s26, %s43_s13  }
  0x1d   : > { %p1430_p5 = por %p227_p2, %p56_p10  ;;  %s298_s18 = sand.u32 1, %s1288_s26  }
  0x1e   : > { %s859_s30 = sshll.u32 %s1296_s28, 3  ;;  %p1058_p7 = scmp.lt.s32.totalorder %s1300_s29, 2 }
  0x1f   : > { %s858_s19 = sshll.u32 %s298_s18, 3  ;;  %s306_s22 = scalar_lea.hbm %s1512_s0, %s859_s30 }
  0x20   : > { %s308_s23 = sshll.u32 %s306_s22, 4  ;;  %s302_s11 = scalar_lea.vmem [#allocation3], %s858_s19  ;;  %s309_s23 = int_to_ptr.hbm [resolvable:$true] %s308_s23 }
  0x21   : > { %s310_s1 = sshll.u32 %s302_s11, 4  ;;  %p1049_p11 = pnand %p1058_p7, %p52_p4  ;;  %s311_s1 = int_to_ptr.vmem [resolvable:$true] %s310_s1 }
  0x22   : > { %s299_s10 = scalar_lea.sflag [#allocation4], %s298_s18  ;;  %319 = sbr.rel (%p1391_p3) target bundleno = 616 (0x268), region = 48 }
  0x23   : > { %1051 = dma.hbm_to_vmem [thread:$0]  (!%p1049_p11), %s309_s23, 128, %s311_s1, %s299_s10  }
  0x24   : > { %s1443_s13 = sand.u32 (!%p1391_p3), 1, %s1284_s25  }
  0x25   : > { %s861_s20 = sshll.u32 (!%p1391_p3), %s1443_s13, 3  ;;  %s322_s30 = scalar_lea.sflag (!%p1391_p3), [#allocation4], %s1443_s13 }
  0x26   : > { %s1449_s19 = scalar_lea.vmem (!%p1391_p3), [#allocation3], %s861_s20 }
  0x27   : > { %1267 = dma.done.wait (%p1419_p13), %s322_s30, 128  }
  0x28   : > { %1269 = vsyncadd (%p1419_p13), %s322_s30, 4294967168 }
  0x29   : > { %1271 = dma.done.wait (%p1383_p1), [#allocation7], 4096  }
  0x2a   : > { %1273 = vsyncadd (%p1383_p1), [#allocation7], 4294963200  ;;  %v923_v0 = vld [vmem:[#allocation6 + $0x70] sm:$0xf]  ;;  %v1012_v1 = vld [vmem:[#allocation6 + $0x74] sm:$0xf0] }
  0x2b   : > { %v1011_v2 = vld [vmem:[#allocation6 + $0x74] sm:$0xf]  ;;  %v924_v3 = vor.u32 %v1012_v1, %v923_v0  ;;  %v925_v4 = vld [vmem:[#allocation6 + $0x78] sm:$0xf0]  ;;  %v915_v5 = vld [vmem:[#allocation6 + $0x60] sm:$0xf] }
  0x2c   : > { %v1010_v6 = vld [vmem:[#allocation6 + $0x64] sm:$0xf0]  ;;  %v928_v7 = vor.u32 %v1011_v2, %v925_v4  ;;  %v1009_v8 = vld [vmem:[#allocation6 + $0x64] sm:$0xf]  ;;  %v917_v9 = vld [vmem:[#allocation6 + $0x68] sm:$0xf0] }
  0x2d   : > { %487 = vmatpush.bf16.msra.mxu0 %v924_v3  ;;  %v916_v10 = vor.u32 %v1010_v6, %v915_v5  ;;  %v920_v11 = vor.u32 %v1009_v8, %v917_v9  ;;  %v907_v12 = vld [vmem:[#allocation6 + $0x50] sm:$0xf]  ;;  %v1008_v13 = vld [vmem:[#allocation6 + $0x54] sm:$0xf0]  ;;  %v1007_v14 = vld [vmem:[#allocation6 + $0x54] sm:$0xf] }
  0x2e   : > { %500 = vmatpush.bf16.msra.mxu1 %v928_v7  ;;  %v909_v15 = vld [vmem:[#allocation6 + $0x58] sm:$0xf0]  ;;  %v908_v16 = vor.u32 %v1008_v13, %v907_v12  ;;  %v899_v18 = vld [vmem:[#allocation6 + $0x40] sm:$0xf]  ;;  %v1006_v19 = vld [vmem:[#allocation6 + $0x44] sm:$0xf0] }
  0x2f   : > { %v912_v17 = vor.u32 %v1007_v14, %v909_v15  ;;  %v1005_v20 = vld [vmem:[#allocation6 + $0x44] sm:$0xf]  ;;  %v901_v21 = vld [vmem:[#allocation6 + $0x48] sm:$0xf0]  ;;  %v900_v22 = vor.u32 %v1006_v19, %v899_v18  ;;  %v1020_v23 = vld [vmem:[#allocation8 + $0x38] sm:$0xff]  ;;  %s994_s18 = sshll.u32 %s1292_s27, 3 }
  0x30   : > { %v1028_v24 = vld [vmem:[#allocation8 + $0x78] sm:$0xff]  ;;  %v904_v25 = vor.u32 %v1005_v20, %v901_v21  ;;  %v891_v26 = vld [vmem:[#allocation6 + $0x30] sm:$0xf]  ;;  %v1003_v28 = vld [vmem:[#allocation6 + $0x34] sm:$0xf]  ;;  %646 = vmatpush.bf16.msra.mxu2 %v1020_v23  ;;  %v1308_v23 = vmov 128.0   ;;  %s733_s10 = scalar_lea.hbm %s1519_s7, %s994_s18 }
  0x31   : > { %488 = vmatpush.bf16.msra.mxu0 %v916_v10  ;;  %v1004_v27 = vld [vmem:[#allocation6 + $0x34] sm:$0xf0]  ;;  %v893_v29 = vld [vmem:[#allocation6 + $0x38] sm:$0xf0]  ;;  %659 = vmatpush.bf16.msra.mxu3 %v1028_v24  ;;  %v1019_v30 = vld [vmem:[#allocation8 + $0x30] sm:$0xff]  ;;  %1120 = vrcp.f32 %v1308_v23  ;;  %s370_s27 = scalar_lea.vmem [#allocation9], %s861_s20 }
  0x32   : > { %501 = vmatpush.bf16.msra.mxu1 %v920_v11  ;;  %v1027_v31 = vld [vmem:[#allocation8 + $0x70] sm:$0xff]  ;;  %v892_v32 = vor.u32 %v1004_v27, %v891_v26  ;;  %v883_v33 = vld [vmem:[#allocation6 + $0x20] sm:$0xf]  ;;  %v896_v34 = vor.u32 %v1003_v28, %v893_v29  ;;  %v1002_v35 = vld [vmem:[#allocation6 + $0x24] sm:$0xf0]  ;;  %s735_s1 = sshll.u32 %s370_s27, 4  ;;  %s736_s1 = int_to_ptr.vmem [resolvable:$true] %s735_s1 }
  0x33   : > { %v1001_v36 = vld [vmem:[#allocation6 + $0x24] sm:$0xf]  ;;  %v885_v37 = vld [vmem:[#allocation6 + $0x28] sm:$0xf0]  ;;  %v884_v40 = vor.u32 %v1002_v35, %v883_v33  ;;  %v875_v42 = vld [vmem:[#allocation6 + $0x10] sm:$0xf] }
  0x34   : > { %647 = vmatpush.bf16.msra.mxu2 %v1019_v30  ;;  %v1018_v38 = vld [vmem:[#allocation8 + $0x28] sm:$0xff]  ;;  %v888_v41 = vor.u32 %v1001_v36, %v885_v37  ;;  %v1000_v43 = vld [vmem:[#allocation6 + $0x14] sm:$0xf0]  ;;  %v999_v44 = vld [vmem:[#allocation6 + $0x14] sm:$0xf]  ;;  %s737_s8 = sshll.u32 %s733_s10, 4  ;;  %s738_s8 = int_to_ptr.hbm [resolvable:$true] %s737_s8 }
  0x35   : > { %489 = vmatpush.bf16.msra.mxu0 %v908_v16  ;;  %660 = vmatpush.bf16.msra.mxu3 %v1027_v31  ;;  %v1026_v39 = vld [vmem:[#allocation8 + $0x68] sm:$0xff]  ;;  %v877_v45 = vld [vmem:[#allocation6 + $0x18] sm:$0xf0]  ;;  %v1017_v46 = vld [vmem:[#allocation8 + $0x20] sm:$0xff]  ;;  %v876_v48 = vor.u32 %v1000_v43, %v875_v42  ;;  %s723_s12 = scalar_lea.sflag [#allocation5], %s1443_s13  ;;  %s1228_s14 = sshra.s32 %s738_s8, 4  ;;  %s1229_s14 = int_to_ptr.hbm [resolvable:$true] %s1228_s14 }
  0x36   : > { %502 = vmatpush.bf16.msra.mxu1 %v912_v17  ;;  %v1025_v47 = vld [vmem:[#allocation8 + $0x60] sm:$0xff]  ;;  %v880_v49 = vor.u32 %v999_v44, %v877_v45  ;;  %v998_v51 = vld [vmem:[#allocation6 + $0x4] sm:$0xf0]  ;;  %v869_v53 = vld [vmem:[#allocation6 + $0x8] sm:$0xf0]  ;;  %s1230_s18 = scalar_lea.hbm %s1229_s14, 8  ;;  %p1235_p9 = scmp.lt.s32.totalorder %s1229_s14, %s1519_s7 }
  0x37   : > { %v867_v50 = vld [vmem:[#allocation6] sm:$0xf]  ;;  %v997_v52 = vld [vmem:[#allocation6 + $0x4] sm:$0xf]  ;;  %v1016_v54 = vld [vmem:[#allocation8 + $0x18] sm:$0xff]  ;;  %v1121_v24 = vpop.eup %1120  ;;  %p1231_p1 = scmp.ne.s32.totalorder %s1229_s14, %s1230_s18  ;;  %s1234_s23 = scalar_lea.hbm %s1519_s7, 16 }
  0x38   : > { %648 = vmatpush.bf16.msra.mxu2 %v1018_v38  ;;  %v1024_v55 = vld [vmem:[#allocation8 + $0x58] sm:$0xff]  ;;  %v868_v56 = vor.u32 %v998_v51, %v867_v50  ;;  %v872_v58 = vor.u32 %v997_v52, %v869_v53  ;;  %v1015_v59 = vld [vmem:[#allocation8 + $0x10] sm:$0xff]  ;;  %v1014_v62 = vld [vmem:[#allocation8 + $0x8] sm:$0xff]  ;;  %vm691_vm0 = vweird.f32 %v1121_v24  ;;  %p1236_p10 = scmp.lt.s32.totalorder %s1234_s23, %s1230_s18 }
  0x39   : > { %490 = vmatpush.bf16.msra.mxu0 %v900_v22  ;;  %661 = vmatpush.bf16.msra.mxu3 %v1026_v39  ;;  %v378_v57 = vld [vmem:[%s1449_s19] sm:$0xff]  ;;  %v1022_v63 = vld [vmem:[#allocation8 + $0x48] sm:$0xff]  ;;  %v1013_v0 = vld [vmem:[#allocation8] sm:$0xff]  ;;  %p1232_p3 = pnand %p1231_p1, %p1423_p0 }
  0x3a   : > { %503 = vmatpush.bf16.msra.mxu1 %v904_v25  ;;  %v1023_v60 = vld [vmem:[#allocation8 + $0x50] sm:$0xff]  ;;  %v379_v61 = vpack.c.bf16 %v378_v57, %v378_v57  ;;  %v1021_v1 = vld [vmem:[#allocation8 + $0x40] sm:$0xff]  ;;  %v687_v25 = vmul.f32 128.0, %v1121_v24  ;;  %p1237_p12 = por %p1236_p10, %p1235_p9 }
  0x3b   : > { %v401_v2 = vld [vmem:[%s1514_s2] sm:$0x3]  ;;  %p1233_p8 = pneg %p1232_p3 }
  0x3c   : > { %649 = vmatpush.bf16.msra.mxu2 %v1017_v46  ;;  %v403_v3 = vperm.slane %v401_v2, 0  ;;  %v404_v4 = vperm.slane %v401_v2, 1  ;;  %v1117_v16 = vld [vmem:[%s1516_s4] ss:$0 sm:$0xff]  ;;  %v688_v26 = vsub.f32 1.0, %v687_v25 }
  0x3d   : > { %491 = vmatpush.bf16.msra.mxu0 %v892_v32  ;;  %662 = vmatpush.bf16.msra.mxu3 %v1025_v47  ;;  %v1118_v43 = vld [vmem:[%s1517_s5] ss:$0 sm:$0xff]  ;;  %p1238_p13 = pnand %p1237_p12, %p1233_p8 }
  0x3e   : > { %504 = vmatpush.bf16.msra.mxu1 %v896_v34  ;;  %v689_v27 = vmul.f32 %v1121_v24, %v688_v26  ;;  %v1119_v46 = vld [vmem:[%s1518_s6] ss:$0 sm:$0xff] }
  0x40   : > { %650 = vmatpush.bf16.msra.mxu2 %v1016_v54  ;;  %v690_v28 = vadd.f32 %v1121_v24, %v689_v27 }
  0x41   : > { %492 = vmatpush.bf16.msra.mxu0 %v884_v40  ;;  %663 = vmatpush.bf16.msra.mxu3 %v1024_v55 }
  0x42   : > { %505 = vmatpush.bf16.msra.mxu1 %v888_v41  ;;  %v692_v29 = vsel %vm691_vm0, %v1121_v24, %v690_v28 }
  0x44   : > { %651 = vmatpush.bf16.msra.mxu2 %v1015_v59 }
  0x45   : > { %493 = vmatpush.bf16.msra.mxu0 %v876_v48  ;;  %664 = vmatpush.bf16.msra.mxu3 %v1023_v60 }
  0x46   : > { %506 = vmatpush.bf16.msra.mxu1 %v880_v49 }
  0x48   : > { %652 = vmatpush.bf16.msra.mxu2 %v1014_v62 }
  0x49   : > { %494 = vmatpush.bf16.msra.mxu0 %v868_v56  ;;  %665 = vmatpush.bf16.msra.mxu3 %v1022_v63 }
  0x4a   : > { %507 = vmatpush.bf16.msra.mxu1 %v872_v58 }
  0x4c   : > { %495 = vmatmul.bf16.vlgmr.msra.gmra.mxu0 %v379_v61  ;;  %653 = vmatpush.bf16.msra.mxu2 %v1013_v0 }
  0x4d   : > { %508 = vmatmul.bf16.vlgmr.msra.gmra.mxu1 %v379_v61  ;;  %666 = vmatpush.bf16.msra.mxu3 %v1021_v1 }
  0xc9   : > { %v496_v5 = vpop.f32.mrf.mxu0 }
  0xca   : > { %v497_v6 = vadd.f32 %v496_v5, %v403_v3  ;;  %v509_v7 = vpop.f32.mrf.mxu1 }
  0xcb   : > { %v510_v8 = vadd.f32 %v509_v7, %v404_v4 }
  0xcc   : > { %v513_v9 = vmax.f32 %v497_v6, 0.0 }
  0xcd   : > { %v514_v10 = vmax.f32 %v510_v8, 0.0 }
  0xce   : > { %v516_v11 = vpack.c.bf16 %v513_v9, %v513_v9 }
  0xcf   : > { %v517_v12 = vpack.c.bf16 %v514_v10, %v514_v10 }
  0xd0   : > { %654 = vmatmul.bf16.vlgmr.msra.gmra.mxu2 %v516_v11 }
  0xd1   : > { %667 = vmatmul.bf16.vlgmr.msra.gmra.mxu3 %v517_v12  ;;  %v498_v13 = vpop.f32.mrf.mxu0 }
  0xd2   : > { %v511_v14 = vpop.f32.mrf.mxu1 }
 0x153   : > { %v655_v15 = vpop.f32.mrf.mxu2 }
 0x154   : > { %v668_v17 = vpop.f32.mrf.mxu3 }
 0x155   : > { %v669_v18 = vadd.f32 %v668_v17, %v655_v15 }
 0x157   : > { %v682_v19 = vadd.f32 %v1117_v16, %v669_v18 }
 0x159   : > { %v683_v20 = vadd.f32 %v682_v19, %v378_v57 }
 0x15b   : > { %684 = vadd.xlane.f32.xlu0 %v683_v20  ;;  %v657_v21 = vpop.f32.mrf.mxu2 }
 0x15c   : > { %v670_v22 = vpop.f32.mrf.mxu3 }
 0x1ce   : > { %v685_v30 = vpop.xlane.xlu0 %684 }
 0x1cf   : > { %v693_v31 = vmul.f32 %v692_v29, %v685_v30 }
 0x1d1   : > { %v694_v32 = vsub.f32 %v683_v20, %v693_v31 }
 0x1d3   : > { %v695_v33 = vmul.f32 %v694_v32, %v694_v32 }
 0x1d5   : > { %696 = vadd.xlane.f32.xlu0 %v695_v33 }
 0x248   : > { %v697_v34 = vpop.xlane.xlu0 %696 }
 0x249   : > { %v698_v35 = vmul.f32 %v697_v34, %v692_v29 }
 0x24b   : > { %v699_v36 = vadd.f32 1e-05, %v698_v35 }
 0x24d   : > { %1122 = vrsqrt.f32 %v699_v36  ;;  %vm706_vm2 = vweird.f32 %v699_v36 }
 0x253   : > { %v1123_v37 = vpop.eup %1122 }
 0x254   : > { %v701_v38 = vmul.f32 %v1123_v37, %v699_v36  ;;  %vm707_vm1 = vweird.f32 %v1123_v37 }
 0x255   : > { %vm708_vm3 = vmor %vm706_vm2, %vm707_vm1 }
 0x256   : > { %v702_v39 = vmul.f32 %v1123_v37, %v701_v38 }
 0x258   : > { %v703_v40 = vmul.f32 0.5, %v702_v39 }
 0x25a   : > { %v704_v41 = vsub.f32 1.5, %v703_v40 }
 0x25c   : > { %v705_v42 = vmul.f32 %v1123_v37, %v704_v41 }
 0x25e   : > { %v709_v44 = vsel %vm708_vm3, %v1123_v37, %v705_v42 }
 0x25f   : > { %v710_v45 = vmul.f32 %v709_v44, %v694_v32 }
 0x261   : > { %v715_v47 = vmul.f32 %v1118_v43, %v710_v45 }
 0x263   : > { %v720_v48 = vadd.f32 %v1119_v46, %v715_v47 }
 0x265   : > { %721 = vst [vmem:[%s370_s27] sm:$0xff] %v720_v48 }
 0x266   : > { %1241 = shalt.err (!%p1238_p13)
}
 0x267   : > { %1039 = dma.vmem_to_hbm [thread:$0]  (%p1423_p0), %s736_s1, 128, %s738_s8, %s723_s12  }
 0x268 PF: > { %s749_s13 = sand.u32 1, %s1280_s24   ;;  %p1053_p2 = pnand %p857_p6, %p1430_p5 }
 0x269   : > { %s750_s10 = scalar_lea.sflag [#allocation5], %s749_s13 }
 0x26a   : > { %p1054_p4 = pneg %p1053_p2 }
 0x26c   : > { %1275 = dma.done.wait (%p1054_p4), %s750_s10, 128  }
 0x26d   : > { %1277 = vsyncadd (%p1054_p4), %s750_s10, 4294967168  ;;  %s24_s29 = sadd.s32 1, %s1300_s29   ;;  %s1527_s24 = smov %s1284_s25 }
 0x26e   : > { %p21_p7 = scmp.ge.s32.totalorder %s24_s29, 4   ;;  %s1528_s25 = smov %s1288_s26 }
 0x26f   : > { %s1529_s26 = smov %s1428_s16  ;;  %s1530_s27 = smov %s1296_s28 }
 0x270   : > { %s1531_s28 = smov %s1533_s9  ;;  %23 = sbr.rel (!%p21_p7) target bundleno = 9 (0x9), region = 114 }
 0x275   :  { %756 = vsyncpa [#allocation4], 1 }
 0x276   :  { %758 = vsyncpa [#allocation4 + $0x1], 1 }
 0x277   :  { %759 = vsyncpa [#allocation7], 1 }
 0x278   :  { %760 = vsyncpa [#allocation5], 1 }
 0x279   :  { %762 = vsyncpa [#allocation5 + $0x1], 1 }

// kernel: _ffn_forward_impl.1
= control target key start
LH: loop header
LB: loop body
LE: loop exit
PB: predicated region body
PF: predicated region fallthrough
CT: control target
= control target key end

     0   :  { %s1512_s0 = inlined_call_operand.hbm [shape: f32[16,128], index: 0, kind: input, shape index: {}]   ;;  %s1513_s1 = inlined_call_operand.hbm [shape: bf16[128,256], index: 1, kind: input, shape index: {}]   ;;  %s1514_s2 = inlined_call_operand.vmem [shape: f32[1,256], index: 2, kind: input, shape index: {}]   ;;  %s1515_s3 = inlined_call_operand.hbm [shape: bf16[256,128], index: 3, kind: input, shape index: {}]   ;;  %s1516_s4 = inlined_call_operand.vmem [shape: f32[1,128], index: 4, kind: input, shape index: {}]   ;;  %s1517_s5 = inlined_call_operand.vmem [shape: f32[1,128], index: 5, kind: input, shape index: {}]   ;;  %s1518_s6 = inlined_call_operand.vmem [shape: f32[1,128], index: 6, kind: input, shape index: {}]   ;;  %s1519_s7 = inlined_call_operand.hbm [shape: f32[16,128], index: 7, kind: output, shape index: {}]  }
   0x1   :  { %1520 = sst [smem:[#allocation13_spill]] %s1513_s1 }
   0x2   :  { %12 = vsyncpa [#allocation4], 0 }
   0x3   :  { %14 = vsyncpa [#allocation4 + $0x1], 0 }
   0x4   :  { %15 = vsyncpa [#allocation7], 0 }
   0x5   :  { %16 = vsyncpa [#allocation5], 0 }
   0x6   :  { %18 = vsyncpa [#allocation5 + $0x1], 0  ;;  %s1349_s24 = smov 0   ;;  %s1351_s25 = smov 0  }
   0x7   :  { %s1353_s26 = smov 0   ;;  %s1355_s27 = smov 0  }
   0x8   :  { %s1357_s28 = smov 0   ;;  %s1359_s29 = smov 0  }
   0x9 LB: > { %s851_s30 = sadd.s32 4294967295, %s1300_s29   ;;  %p853_p0 = scmp.ge.s32.totalorder %s1300_s29, 1  ;;  %s1300_s29 = sphi %s1359_s29, %s24_s29   ;;  %s1296_s28 = sphi %s1357_s28, %s1531_s28   ;;  %s1292_s27 = sphi %s1355_s27, %s1530_s27   ;;  %s1288_s26 = sphi %s1353_s26, %s1529_s26   ;;  %s1284_s25 = sphi %s1351_s25, %s1528_s25   ;;  %s1280_s24 = sphi %s1349_s24, %s1527_s24  }
   0xa   : > { %p1383_p1 = scmp.eq.s32.totalorder %s851_s30, 0  ;;  %p234_p2 = scmp.lt.s32.totalorder %s1300_s29, 3 }
   0xb   : > { %s1522_s1 = sld [smem:[#allocation13_spill]]  ;;  %s1302_s13 = smov [#allocation6]  }
   0xc   : > { %p1391_p3 = pnand %p853_p0, %p234_p2  ;;  %s250_s14 = sshll.u32 %s1302_s13, 4  ;;  %s251_s14 = int_to_ptr.vmem [resolvable:$true] %s250_s14 }
   0xd   : > { %p857_p6 = scmp.ge.s32.totalorder %s1300_s29, 2  ;;  %s273_s17 = sshll.u32 %s1515_s3, 4  ;;  %s274_s17 = int_to_ptr.hbm [resolvable:$true] %s273_s17 }
   0xe   : > { %p1041_p4 = pneg %p1391_p3  ;;  %s1303_s18 = smov 128  }
   0xf   : > { %s1304_s19 = smov 8   ;;  %s1305_s20 = smov [#allocation8]  }
  0x10   : > { %p1042_p5 = pnand %p1041_p4, %p1383_p1  ;;  %s275_s21 = sshll.u32 %s1305_s20, 4  ;;  %s276_s21 = int_to_ptr.vmem [resolvable:$true] %s275_s21 }
  0x11   : > { %s248_s11 = sshll.u32 %s1522_s1, 4  ;;  %s1306_s22 = smov 64   ;;  %s249_s11 = int_to_ptr.hbm [resolvable:$true] %s248_s11 }
  0x12   : > { %1044 = dma.hbm_to_vmem [thread:$0]  (!%p1042_p5), %s249_s11, 2048, %s251_s14, [#allocation7], %s1303_s18, %s1303_s18, %s1304_s19  }
  0x13   : > { %s1307_s23 = smov 4   ;;  %s36_s9 = sadd.s32 1, %s1296_s28 }
  0x14   : > { %1047 = dma.hbm_to_vmem [thread:$0]  (!%p1042_p5), %s274_s17, 2048, %s276_s21, [#allocation7], %s1306_s22, %s1306_s22, %s1307_s23  }
  0x15   : > { %s852_s10 = sadd.s32 4294967294, %s1300_s29   ;;  %p38_p7 = scmp.ge.s32.totalorder %s36_s9, 2 }
  0x16   : > { %s43_s13 = sadd.s32 1, %s1288_s26  ;;  %p50_p8 = scmp.ne.s32.totalorder %s1288_s26, %s1284_s25 }
  0x17   : > { %s1533_s9 = smov (%p38_p7, %s36_s9), 0  ;;  %p51_p9 = scmp.eq.s32.totalorder %s1300_s29, 0 }
  0x18   : > { %p56_p10 = scmp.ne.s32.totalorder %s1284_s25, %s1280_s24  ;;  %s40_s11 = ssub.s32 %s1296_s28, %s1533_s9 }
  0x19   : > { %p221_p11 = scmp.eq.s32.totalorder %s851_s30, 1  ;;  %p41_p12 = scmp.eq.s32.totalorder %s40_s11, 0 }
  0x1a   : > { %p1419_p13 = por %p1383_p1, %p56_p10  ;;  %p227_p2 = scmp.eq.s32.totalorder %s852_s10, 1 }
  0x1b   : > { %p1423_p0 = por %p221_p11, %p50_p8  ;;  %p52_p4 = por %p51_p9, %p50_p8 }
  0x1c   : > { %s1428_s16 = scalar_select %p41_p12, %s1288_s26, %s43_s13  }
  0x1d   : > { %p1430_p5 = por %p227_p2, %p56_p10  ;;  %s298_s18 = sand.u32 1, %s1288_s26  }
  0x1e   : > { %s859_s30 = sshll.u32 %s1296_s28, 3  ;;  %p1058_p7 = scmp.lt.s32.totalorder %s1300_s29, 2 }
  0x1f   : > { %s858_s19 = sshll.u32 %s298_s18, 3  ;;  %s306_s22 = scalar_lea.hbm %s1512_s0, %s859_s30 }
  0x20   : > { %s308_s23 = sshll.u32 %s306_s22, 4  ;;  %s302_s11 = scalar_lea.vmem [#allocation3], %s858_s19  ;;  %s309_s23 = int_to_ptr.hbm [resolvable:$true] %s308_s23 }
  0x21   : > { %s310_s1 = sshll.u32 %s302_s11, 4  ;;  %p1049_p11 = pnand %p1058_p7, %p52_p4  ;;  %s311_s1 = int_to_ptr.vmem [resolvable:$true] %s310_s1 }
  0x22   : > { %s299_s10 = scalar_lea.sflag [#allocation4], %s298_s18  ;;  %319 = sbr.rel (%p1391_p3) target bundleno = 616 (0x268), region = 48 }
  0x23   : > { %1051 = dma.hbm_to_vmem [thread:$0]  (!%p1049_p11), %s309_s23, 128, %s311_s1, %s299_s10  }
  0x24   : > { %s1443_s13 = sand.u32 (!%p1391_p3), 1, %s1284_s25  }
  0x25   : > { %s861_s20 = sshll.u32 (!%p1391_p3), %s1443_s13, 3  ;;  %s322_s30 = scalar_lea.sflag (!%p1391_p3), [#allocation4], %s1443_s13 }
  0x26   : > { %s1449_s19 = scalar_lea.vmem (!%p1391_p3), [#allocation3], %s861_s20 }
  0x27   : > { %1267 = dma.done.wait (%p1419_p13), %s322_s30, 128  }
  0x28   : > { %1269 = vsyncadd (%p1419_p13), %s322_s30, 4294967168 }
  0x29   : > { %1271 = dma.done.wait (%p1383_p1), [#allocation7], 4096  }
  0x2a   : > { %1273 = vsyncadd (%p1383_p1), [#allocation7], 4294963200  ;;  %v923_v0 = vld [vmem:[#allocation6 + $0x70] sm:$0xf]  ;;  %v1012_v1 = vld [vmem:[#allocation6 + $0x74] sm:$0xf0] }
  0x2b   : > { %v1011_v2 = vld [vmem:[#allocation6 + $0x74] sm:$0xf]  ;;  %v924_v3 = vor.u32 %v1012_v1, %v923_v0  ;;  %v925_v4 = vld [vmem:[#allocation6 + $0x78] sm:$0xf0]  ;;  %v915_v5 = vld [vmem:[#allocation6 + $0x60] sm:$0xf] }
  0x2c   : > { %v1010_v6 = vld [vmem:[#allocation6 + $0x64] sm:$0xf0]  ;;  %v928_v7 = vor.u32 %v1011_v2, %v925_v4  ;;  %v1009_v8 = vld [vmem:[#allocation6 + $0x64] sm:$0xf]  ;;  %v917_v9 = vld [vmem:[#allocation6 + $0x68] sm:$0xf0] }
  0x2d   : > { %487 = vmatpush.bf16.msra.mxu0 %v924_v3  ;;  %v916_v10 = vor.u32 %v1010_v6, %v915_v5  ;;  %v920_v11 = vor.u32 %v1009_v8, %v917_v9  ;;  %v907_v12 = vld [vmem:[#allocation6 + $0x50] sm:$0xf]  ;;  %v1008_v13 = vld [vmem:[#allocation6 + $0x54] sm:$0xf0]  ;;  %v1007_v14 = vld [vmem:[#allocation6 + $0x54] sm:$0xf] }
  0x2e   : > { %500 = vmatpush.bf16.msra.mxu1 %v928_v7  ;;  %v909_v15 = vld [vmem:[#allocation6 + $0x58] sm:$0xf0]  ;;  %v908_v16 = vor.u32 %v1008_v13, %v907_v12  ;;  %v899_v18 = vld [vmem:[#allocation6 + $0x40] sm:$0xf]  ;;  %v1006_v19 = vld [vmem:[#allocation6 + $0x44] sm:$0xf0] }
  0x2f   : > { %v912_v17 = vor.u32 %v1007_v14, %v909_v15  ;;  %v1005_v20 = vld [vmem:[#allocation6 + $0x44] sm:$0xf]  ;;  %v901_v21 = vld [vmem:[#allocation6 + $0x48] sm:$0xf0]  ;;  %v900_v22 = vor.u32 %v1006_v19, %v899_v18  ;;  %v1020_v23 = vld [vmem:[#allocation8 + $0x38] sm:$0xff]  ;;  %s994_s18 = sshll.u32 %s1292_s27, 3 }
  0x30   : > { %v1028_v24 = vld [vmem:[#allocation8 + $0x78] sm:$0xff]  ;;  %v904_v25 = vor.u32 %v1005_v20, %v901_v21  ;;  %v891_v26 = vld [vmem:[#allocation6 + $0x30] sm:$0xf]  ;;  %v1003_v28 = vld [vmem:[#allocation6 + $0x34] sm:$0xf]  ;;  %646 = vmatpush.bf16.msra.mxu2 %v1020_v23  ;;  %v1308_v23 = vmov 128.0   ;;  %s733_s10 = scalar_lea.hbm %s1519_s7, %s994_s18 }
  0x31   : > { %488 = vmatpush.bf16.msra.mxu0 %v916_v10  ;;  %v1004_v27 = vld [vmem:[#allocation6 + $0x34] sm:$0xf0]  ;;  %v893_v29 = vld [vmem:[#allocation6 + $0x38] sm:$0xf0]  ;;  %659 = vmatpush.bf16.msra.mxu3 %v1028_v24  ;;  %v1019_v30 = vld [vmem:[#allocation8 + $0x30] sm:$0xff]  ;;  %1120 = vrcp.f32 %v1308_v23  ;;  %s370_s27 = scalar_lea.vmem [#allocation9], %s861_s20 }
  0x32   : > { %501 = vmatpush.bf16.msra.mxu1 %v920_v11  ;;  %v1027_v31 = vld [vmem:[#allocation8 + $0x70] sm:$0xff]  ;;  %v892_v32 = vor.u32 %v1004_v27, %v891_v26  ;;  %v883_v33 = vld [vmem:[#allocation6 + $0x20] sm:$0xf]  ;;  %v896_v34 = vor.u32 %v1003_v28, %v893_v29  ;;  %v1002_v35 = vld [vmem:[#allocation6 + $0x24] sm:$0xf0]  ;;  %s735_s1 = sshll.u32 %s370_s27, 4  ;;  %s736_s1 = int_to_ptr.vmem [resolvable:$true] %s735_s1 }
  0x33   : > { %v1001_v36 = vld [vmem:[#allocation6 + $0x24] sm:$0xf]  ;;  %v885_v37 = vld [vmem:[#allocation6 + $0x28] sm:$0xf0]  ;;  %v884_v40 = vor.u32 %v1002_v35, %v883_v33  ;;  %v875_v42 = vld [vmem:[#allocation6 + $0x10] sm:$0xf] }
  0x34   : > { %647 = vmatpush.bf16.msra.mxu2 %v1019_v30  ;;  %v1018_v38 = vld [vmem:[#allocation8 + $0x28] sm:$0xff]  ;;  %v888_v41 = vor.u32 %v1001_v36, %v885_v37  ;;  %v1000_v43 = vld [vmem:[#allocation6 + $0x14] sm:$0xf0]  ;;  %v999_v44 = vld [vmem:[#allocation6 + $0x14] sm:$0xf]  ;;  %s737_s8 = sshll.u32 %s733_s10, 4  ;;  %s738_s8 = int_to_ptr.hbm [resolvable:$true] %s737_s8 }
  0x35   : > { %489 = vmatpush.bf16.msra.mxu0 %v908_v16  ;;  %660 = vmatpush.bf16.msra.mxu3 %v1027_v31  ;;  %v1026_v39 = vld [vmem:[#allocation8 + $0x68] sm:$0xff]  ;;  %v877_v45 = vld [vmem:[#allocation6 + $0x18] sm:$0xf0]  ;;  %v1017_v46 = vld [vmem:[#allocation8 + $0x20] sm:$0xff]  ;;  %v876_v48 = vor.u32 %v1000_v43, %v875_v42  ;;  %s723_s12 = scalar_lea.sflag [#allocation5], %s1443_s13  ;;  %s1228_s14 = sshra.s32 %s738_s8, 4  ;;  %s1229_s14 = int_to_ptr.hbm [resolvable:$true] %s1228_s14 }
  0x36   : > { %502 = vmatpush.bf16.msra.mxu1 %v912_v17  ;;  %v1025_v47 = vld [vmem:[#allocation8 + $0x60] sm:$0xff]  ;;  %v880_v49 = vor.u32 %v999_v44, %v877_v45  ;;  %v998_v51 = vld [vmem:[#allocation6 + $0x4] sm:$0xf0]  ;;  %v869_v53 = vld [vmem:[#allocation6 + $0x8] sm:$0xf0]  ;;  %s1230_s18 = scalar_lea.hbm %s1229_s14, 8  ;;  %p1235_p9 = scmp.lt.s32.totalorder %s1229_s14, %s1519_s7 }
  0x37   : > { %v867_v50 = vld [vmem:[#allocation6] sm:$0xf]  ;;  %v997_v52 = vld [vmem:[#allocation6 + $0x4] sm:$0xf]  ;;  %v1016_v54 = vld [vmem:[#allocation8 + $0x18] sm:$0xff]  ;;  %v1121_v24 = vpop.eup %1120  ;;  %p1231_p1 = scmp.ne.s32.totalorder %s1229_s14, %s1230_s18  ;;  %s1234_s23 = scalar_lea.hbm %s1519_s7, 16 }
  0x38   : > { %648 = vmatpush.bf16.msra.mxu2 %v1018_v38  ;;  %v1024_v55 = vld [vmem:[#allocation8 + $0x58] sm:$0xff]  ;;  %v868_v56 = vor.u32 %v998_v51, %v867_v50  ;;  %v872_v58 = vor.u32 %v997_v52, %v869_v53  ;;  %v1015_v59 = vld [vmem:[#allocation8 + $0x10] sm:$0xff]  ;;  %v1014_v62 = vld [vmem:[#allocation8 + $0x8] sm:$0xff]  ;;  %vm691_vm0 = vweird.f32 %v1121_v24  ;;  %p1236_p10 = scmp.lt.s32.totalorder %s1234_s23, %s1230_s18 }
  0x39   : > { %490 = vmatpush.bf16.msra.mxu0 %v900_v22  ;;  %661 = vmatpush.bf16.msra.mxu3 %v1026_v39  ;;  %v378_v57 = vld [vmem:[%s1449_s19] sm:$0xff]  ;;  %v1022_v63 = vld [vmem:[#allocation8 + $0x48] sm:$0xff]  ;;  %v1013_v0 = vld [vmem:[#allocation8] sm:$0xff]  ;;  %p1232_p3 = pnand %p1231_p1, %p1423_p0 }
  0x3a   : > { %503 = vmatpush.bf16.msra.mxu1 %v904_v25  ;;  %v1023_v60 = vld [vmem:[#allocation8 + $0x50] sm:$0xff]  ;;  %v379_v61 = vpack.c.bf16 %v378_v57, %v378_v57  ;;  %v1021_v1 = vld [vmem:[#allocation8 + $0x40] sm:$0xff]  ;;  %v687_v25 = vmul.f32 128.0, %v1121_v24  ;;  %p1237_p12 = por %p1236_p10, %p1235_p9 }
  0x3b   : > { %v401_v2 = vld [vmem:[%s1514_s2] sm:$0x3]  ;;  %p1233_p8 = pneg %p1232_p3 }
  0x3c   : > { %649 = vmatpush.bf16.msra.mxu2 %v1017_v46  ;;  %v403_v3 = vperm.slane %v401_v2, 0  ;;  %v404_v4 = vperm.slane %v401_v2, 1  ;;  %v1117_v16 = vld [vmem:[%s1516_s4] ss:$0 sm:$0xff]  ;;  %v688_v26 = vsub.f32 1.0, %v687_v25 }
  0x3d   : > { %491 = vmatpush.bf16.msra.mxu0 %v892_v32  ;;  %662 = vmatpush.bf16.msra.mxu3 %v1025_v47  ;;  %v1118_v43 = vld [vmem:[%s1517_s5] ss:$0 sm:$0xff]  ;;  %p1238_p13 = pnand %p1237_p12, %p1233_p8 }
  0x3e   : > { %504 = vmatpush.bf16.msra.mxu1 %v896_v34  ;;  %v689_v27 = vmul.f32 %v1121_v24, %v688_v26  ;;  %v1119_v46 = vld [vmem:[%s1518_s6] ss:$0 sm:$0xff] }
  0x40   : > { %650 = vmatpush.bf16.msra.mxu2 %v1016_v54  ;;  %v690_v28 = vadd.f32 %v1121_v24, %v689_v27 }
  0x41   : > { %492 = vmatpush.bf16.msra.mxu0 %v884_v40  ;;  %663 = vmatpush.bf16.msra.mxu3 %v1024_v55 }
  0x42   : > { %505 = vmatpush.bf16.msra.mxu1 %v888_v41  ;;  %v692_v29 = vsel %vm691_vm0, %v1121_v24, %v690_v28 }
  0x44   : > { %651 = vmatpush.bf16.msra.mxu2 %v1015_v59 }
  0x45   : > { %493 = vmatpush.bf16.msra.mxu0 %v876_v48  ;;  %664 = vmatpush.bf16.msra.mxu3 %v1023_v60 }
  0x46   : > { %506 = vmatpush.bf16.msra.mxu1 %v880_v49 }
  0x48   : > { %652 = vmatpush.bf16.msra.mxu2 %v1014_v62 }
  0x49   : > { %494 = vmatpush.bf16.msra.mxu0 %v868_v56  ;;  %665 = vmatpush.bf16.msra.mxu3 %v1022_v63 }
  0x4a   : > { %507 = vmatpush.bf16.msra.mxu1 %v872_v58 }
  0x4c   : > { %495 = vmatmul.bf16.vlgmr.msra.gmra.mxu0 %v379_v61  ;;  %653 = vmatpush.bf16.msra.mxu2 %v1013_v0 }
  0x4d   : > { %508 = vmatmul.bf16.vlgmr.msra.gmra.mxu1 %v379_v61  ;;  %666 = vmatpush.bf16.msra.mxu3 %v1021_v1 }
  0xc9   : > { %v496_v5 = vpop.f32.mrf.mxu0 }
  0xca   : > { %v497_v6 = vadd.f32 %v496_v5, %v403_v3  ;;  %v509_v7 = vpop.f32.mrf.mxu1 }
  0xcb   : > { %v510_v8 = vadd.f32 %v509_v7, %v404_v4 }
  0xcc   : > { %v513_v9 = vmax.f32 %v497_v6, 0.0 }
  0xcd   : > { %v514_v10 = vmax.f32 %v510_v8, 0.0 }
  0xce   : > { %v516_v11 = vpack.c.bf16 %v513_v9, %v513_v9 }
  0xcf   : > { %v517_v12 = vpack.c.bf16 %v514_v10, %v514_v10 }
  0xd0   : > { %654 = vmatmul.bf16.vlgmr.msra.gmra.mxu2 %v516_v11 }
  0xd1   : > { %667 = vmatmul.bf16.vlgmr.msra.gmra.mxu3 %v517_v12  ;;  %v498_v13 = vpop.f32.mrf.mxu0 }
  0xd2   : > { %v511_v14 = vpop.f32.mrf.mxu1 }
 0x153   : > { %v655_v15 = vpop.f32.mrf.mxu2 }
 0x154   : > { %v668_v17 = vpop.f32.mrf.mxu3 }
 0x155   : > { %v669_v18 = vadd.f32 %v668_v17, %v655_v15 }
 0x157   : > { %v682_v19 = vadd.f32 %v1117_v16, %v669_v18 }
 0x159   : > { %v683_v20 = vadd.f32 %v682_v19, %v378_v57 }
 0x15b   : > { %684 = vadd.xlane.f32.xlu0 %v683_v20  ;;  %v657_v21 = vpop.f32.mrf.mxu2 }
 0x15c   : > { %v670_v22 = vpop.f32.mrf.mxu3 }
 0x1ce   : > { %v685_v30 = vpop.xlane.xlu0 %684 }
 0x1cf   : > { %v693_v31 = vmul.f32 %v692_v29, %v685_v30 }
 0x1d1   : > { %v694_v32 = vsub.f32 %v683_v20, %v693_v31 }
 0x1d3   : > { %v695_v33 = vmul.f32 %v694_v32, %v694_v32 }
 0x1d5   : > { %696 = vadd.xlane.f32.xlu0 %v695_v33 }
 0x248   : > { %v697_v34 = vpop.xlane.xlu0 %696 }
 0x249   : > { %v698_v35 = vmul.f32 %v697_v34, %v692_v29 }
 0x24b   : > { %v699_v36 = vadd.f32 1e-05, %v698_v35 }
 0x24d   : > { %1122 = vrsqrt.f32 %v699_v36  ;;  %vm706_vm2 = vweird.f32 %v699_v36 }
 0x253   : > { %v1123_v37 = vpop.eup %1122 }
 0x254   : > { %v701_v38 = vmul.f32 %v1123_v37, %v699_v36  ;;  %vm707_vm1 = vweird.f32 %v1123_v37 }
 0x255   : > { %vm708_vm3 = vmor %vm706_vm2, %vm707_vm1 }
 0x256   : > { %v702_v39 = vmul.f32 %v1123_v37, %v701_v38 }
 0x258   : > { %v703_v40 = vmul.f32 0.5, %v702_v39 }
 0x25a   : > { %v704_v41 = vsub.f32 1.5, %v703_v40 }
 0x25c   : > { %v705_v42 = vmul.f32 %v1123_v37, %v704_v41 }
 0x25e   : > { %v709_v44 = vsel %vm708_vm3, %v1123_v37, %v705_v42 }
 0x25f   : > { %v710_v45 = vmul.f32 %v709_v44, %v694_v32 }
 0x261   : > { %v715_v47 = vmul.f32 %v1118_v43, %v710_v45 }
 0x263   : > { %v720_v48 = vadd.f32 %v1119_v46, %v715_v47 }
 0x265   : > { %721 = vst [vmem:[%s370_s27] sm:$0xff] %v720_v48 }
 0x266   : > { %1241 = shalt.err (!%p1238_p13)
}
 0x267   : > { %1039 = dma.vmem_to_hbm [thread:$0]  (%p1423_p0), %s736_s1, 128, %s738_s8, %s723_s12  }
 0x268 PF: > { %s749_s13 = sand.u32 1, %s1280_s24   ;;  %p1053_p2 = pnand %p857_p6, %p1430_p5 }
 0x269   : > { %s750_s10 = scalar_lea.sflag [#allocation5], %s749_s13 }
 0x26a   : > { %p1054_p4 = pneg %p1053_p2 }
 0x26c   : > { %1275 = dma.done.wait (%p1054_p4), %s750_s10, 128  }
 0x26d   : > { %1277 = vsyncadd (%p1054_p4), %s750_s10, 4294967168  ;;  %s24_s29 = sadd.s32 1, %s1300_s29   ;;  %s1527_s24 = smov %s1284_s25 }
 0x26e   : > { %p21_p7 = scmp.ge.s32.totalorder %s24_s29, 4   ;;  %s1528_s25 = smov %s1288_s26 }
 0x26f   : > { %s1529_s26 = smov %s1428_s16  ;;  %s1530_s27 = smov %s1296_s28 }
 0x270   : > { %s1531_s28 = smov %s1533_s9  ;;  %23 = sbr.rel (!%p21_p7) target bundleno = 9 (0x9), region = 114 }
 0x275   :  { %756 = vsyncpa [#allocation4], 1 }
 0x276   :  { %758 = vsyncpa [#allocation4 + $0x1], 1 }
 0x277   :  { %759 = vsyncpa [#allocation7], 1 }
 0x278   :  { %760 = vsyncpa [#allocation5], 1 }
 0x279   :  { %762 = vsyncpa [#allocation5 + $0x1], 1 }

</bundles_post_ra>
